<compile_context>
chip_gen: v7x
topology: tpu7x:2x2x1
jax: 0.10.0
libtpu: 0.0.40
codegen_flags: <defaults>
</compile_context>

<pallas_src>
import functools

import jax
import jax.numpy as jnp
from jax import lax
from jax.experimental import pallas as pl
from jax.experimental.pallas import tpu as pltpu


def _focal_loss_kernel(logits_ref, target_ref, out_ref, acc_ref, *,
                       gamma, n_total, tile_n, tiles_per_part, needs_mask):
    p = pl.program_id(0)          # partition (parallel axis -> TensorCores)
    i = pl.program_id(1)          # tile within partition (reduction axis)

    @pl.when(i == 0)
    def _init():
        acc_ref[...] = jnp.zeros_like(acc_ref)

    # Cast to f32 in-kernel (input may be bf16 -> no wrapper upcast, halves the
    # HBM DMA bytes for bf16).  Keeping the (tile_n, C) max/subtract in bf16 on
    # v6e/v7x is a further option but costs accuracy vs the f32 reference.
    x = logits_ref[...].astype(jnp.float32)                  # (tile_n, C)
    t = target_ref[...]                                       # (tile_n, 1) int32
    tn, c = x.shape

    # --- numerically stable log-softmax pieces: one full-tile exp -----------
    m = jnp.max(x, axis=1, keepdims=True)                     # (tile_n, 1)
    shifted = x - m                                            # (tile_n, C)
    lse = jnp.log(jnp.sum(jnp.exp(shifted), axis=1, keepdims=True))

    # --- gather target column BEFORE the focal modulation -------------------
    cls_idx = lax.broadcasted_iota(jnp.int32, (1, c), 1)       # (1, C) row iota
    shifted_t = jnp.sum(jnp.where(cls_idx == t, shifted, 0.0),
                        axis=1, keepdims=True)                 # (tile_n, 1)

    logpt_t = shifted_t - lse                                  # (tile_n, 1)
    pt_t = jnp.exp(logpt_t)                                    # column-only exp

    one_minus_pt = 1.0 - pt_t
    if float(gamma) == 2.0:
        focal = jnp.square(one_minus_pt)                       # VPU mul, no pow
    elif float(gamma) == int(gamma):
        focal = lax.integer_pow(one_minus_pt, int(gamma))
    else:
        # pt can round to slightly > 1 -> clamp before the non-integer pow.
        focal = jnp.maximum(one_minus_pt, 0.0) ** gamma
    mod_t = focal * logpt_t                                    # (tile_n, 1)

    if needs_mask:
        g = p * tiles_per_part + i                             # global tile idx
        no_tail = (g + 1) * tile_n <= n_total                  # scalar bool

        @pl.when(no_tail)
        def _full():
            acc_ref[...] += -jnp.sum(mod_t, keepdims=True)

        @pl.when(jnp.logical_not(no_tail))
        def _tail():
            row = g * tile_n + lax.broadcasted_iota(jnp.int32, (tn, 1), 0)
            contrib = jnp.where(row < n_total, mod_t, 0.0)
            acc_ref[...] += -jnp.sum(contrib, keepdims=True)
    else:
        acc_ref[...] += -jnp.sum(mod_t, keepdims=True)

    @pl.when(i == pl.num_programs(1) - 1)
    def _finalize():
        # Lane-dense (1, 8, 128) partial-sum block, one per partition.
        out_ref[...] = jnp.broadcast_to(acc_ref[...], (8, 128)).reshape(1, 8, 128)


def _vmem_capacity_bytes():
    try:
        return int(pltpu.get_tpu_info().vmem_capacity_bytes)
    except Exception:
        return 64 * 1024 * 1024          # conservative default (v7x per-TC)


def focal_loss(logits, target, gamma=2.0, tile_n=None):
    """Pallas TPU implementation of FocalLoss.forward (weight=None, mean)."""
    n, c = logits.shape
    itemsize = jnp.dtype(logits.dtype).itemsize
    sub = max(8, 32 // itemsize)          # sublane packing: 8 f32 / 16 bf16 / 32 i8

    # Generation-aware VMEM budget: ~48 MiB on v7x (64 MiB physical per TC),
    # ~96 MiB on v5e/v6e (128 MiB physical).
    vmem_budget = int(min(_vmem_capacity_bytes() * 3 // 4, 96 * 1024 * 1024))

    # --- pick the batch tile ------------------------------------------------
    if tile_n is None:
        # Target multi-MiB logits blocks so the ~0.35us/step overhead is hidden,
        # capped so 2 inputs x 2 pipeline buffers fit inside the VMEM budget.
        per_buf = min(4 * 1024 * 1024, vmem_budget // 4)
        tile_n = max(sub, per_buf // max(1, c * itemsize))
    tile_n = int(min(int(tile_n), n))
    if tile_n < n:
        tile_n = max(sub, (tile_n // sub) * sub)
        if tile_n >= n:
            tile_n = n
    num_tiles = int(pl.cdiv(n, tile_n))

    # --- partition tiles across TensorCores (v7x has 2; harmless elsewhere) --
    p_parts = 2 if num_tiles >= 2 else 1
    tiles_per_part = int(pl.cdiv(num_tiles, p_parts))
    needs_mask = bool(p_parts * tiles_per_part * tile_n > n)

    target2d = target.reshape(n, 1).astype(jnp.int32)

    kernel = functools.partial(
        _focal_loss_kernel, gamma=float(gamma), n_total=int(n),
        tile_n=int(tile_n), tiles_per_part=int(tiles_per_part),
        needs_mask=needs_mask)

    def _tile_map(p, i, _tpp=tiles_per_part, _last=num_tiles - 1):
        # Clamp so padded partition tiles never issue an out-of-bounds DMA;
        # their rows are masked out inside the kernel anyway.
        return (jnp.minimum(p * _tpp + i, _last), 0)

    out = pl.pallas_call(
        kernel,
        out_shape=jax.ShapeDtypeStruct((p_parts, 8, 128), jnp.float32),
        grid_spec=pltpu.PrefetchScalarGridSpec(
            num_scalar_prefetch=0,
            grid=(p_parts, tiles_per_part),
            in_specs=[
                pl.BlockSpec((tile_n, c), _tile_map),   # logits tile
                pl.BlockSpec((tile_n, 1), _tile_map),   # target tile
            ],
            out_specs=pl.BlockSpec((1, 8, 128), lambda p, i: (p, 0, 0)),
            scratch_shapes=[pltpu.VMEM((1, 1), jnp.float32)],  # running -sum
        ),
        compiler_params=pltpu.CompilerParams(
            dimension_semantics=("parallel", "arbitrary"),
            vmem_limit_bytes=int(vmem_budget),
        ),
    )(logits, target2d)

    # Per-partition partial sums -> mean over the TRUE batch size.
    return jnp.sum(out[:, 0, 0]) / jnp.float32(n)


def focal_loss_ref(logits, target, gamma=2.0):
    """Pure-JAX reference mirroring the PyTorch module."""
    logpt = jax.nn.log_softmax(logits.astype(jnp.float32), axis=1)
    pt = jnp.exp(logpt)
    mod = ((1.0 - pt) ** gamma) * logpt
    picked = jnp.take_along_axis(mod, target[:, None].astype(jnp.int32), axis=1)[:, 0]
    return -jnp.mean(picked)


if __name__ == "__main__":
    key = jax.random.PRNGKey(0)
    k1, k2, k3, k4 = jax.random.split(key, 4)

    # Case 1: small batch, default (auto) tile -> single full-batch block.
    N1, C1 = 8, 16
    logits1 = jax.random.normal(k1, (N1, C1), dtype=jnp.float32)
    target1 = jax.random.randint(k2, (N1,), 0, C1, dtype=jnp.int32)
    out1 = jax.block_until_ready(focal_loss(logits1, target1, gamma=2.0))
    ref1 = jax.block_until_ready(focal_loss_ref(logits1, target1, gamma=2.0))
    assert jnp.allclose(out1, ref1, rtol=1e-5, atol=1e-5), (out1, ref1)

    # Case 2: multi-tile + 2 partitions + tail mask + one padded partition tile.
    N2, C2 = 76, 16
    logits2 = jax.random.normal(k3, (N2, C2), dtype=jnp.float32)
    target2 = jax.random.randint(k4, (N2,), 0, C2, dtype=jnp.int32)
    out2 = jax.block_until_ready(focal_loss(logits2, target2, gamma=2.0, tile_n=16))
    ref2 = jax.block_until_ready(focal_loss_ref(logits2, target2, gamma=2.0))
    assert jnp.allclose(out2, ref2, rtol=1e-5, atol=1e-5), (out2, ref2)

    # Case 3: bf16 logits fed directly (in-kernel cast; 16-row sublane rounding).
    logits3 = logits2.astype(jnp.bfloat16)
    out3 = jax.block_until_ready(focal_loss(logits3, target2, gamma=2.0, tile_n=48))
    ref3 = jax.block_until_ready(focal_loss_ref(logits3, target2, gamma=2.0))
    assert jnp.allclose(out3, ref3, rtol=1e-4, atol=1e-4), (out3, ref3)

    # Case 4: non-integer gamma (clamped pow path).
    out4 = jax.block_until_ready(focal_loss(logits2, target2, gamma=1.5, tile_n=24))
    ref4 = jax.block_until_ready(focal_loss_ref(logits2, target2, gamma=1.5))
    assert jnp.allclose(out4, ref4, rtol=1e-5, atol=1e-5), (out4, ref4)

    print("KERNEL_OK")
</pallas_src>

<mosaic_0001>
module attributes {stable_mosaic.version = 11 : i64} {
  func.func @_focal_loss_kernel(%arg0: i32, %arg1: i32, %arg2: memref<8x16xf32, #tpu.memory_space<vmem>>, %arg3: memref<8x1xi32, #tpu.memory_space<vmem>>, %arg4: memref<1x8x128xf32, #tpu.memory_space<vmem>>, %arg5: memref<1x1xf32, #tpu.memory_space<vmem>>) attributes {dimension_semantics = [#tpu.dimension_semantics<parallel>, #tpu.dimension_semantics<arbitrary>], iteration_bounds = array<i64: 1, 1>, scalar_prefetch = 0 : i64, scratch_operands = 1 : i64, tpu.core_type = #tpu.core_type<tc>, window_params = [{transform_indices = @transform_0, window_bounds = array<i64: 8, 16>}, {transform_indices = @transform_1, window_bounds = array<i64: 8, 1>}, {transform_indices = @transform_2, window_bounds = array<i64: 1, 8, 128>}]} {
    %c0_i32 = arith.constant 0 : i32
    %0 = arith.cmpi eq, %arg1, %c0_i32 : i32
    %1 = arith.extui %0 : i1 to i32
    %c0_i32_0 = arith.constant 0 : i32
    %2 = arith.cmpi ne, %1, %c0_i32_0 : i32
    scf.if %2 {
      %cst_16 = arith.constant 0.000000e+00 : f32
      %40 = vector.broadcast %cst_16 : f32 to vector<1x1xf32>
      %c0_17 = arith.constant 0 : index
      %c0_18 = arith.constant 0 : index
      %41 = vector.load %arg5[%c0_17, %c0_18] : memref<1x1xf32, #tpu.memory_space<vmem>>, vector<1x1xf32>
      tpu.vector_store %arg5[%c0_17, %c0_18], %40 {strides = array<i32>} : memref<1x1xf32, #tpu.memory_space<vmem>>, vector<1x1xf32>,
    } else {
    }
    %c0 = arith.constant 0 : index
    %c0_1 = arith.constant 0 : index
    %3 = vector.load %arg2[%c0, %c0_1] : memref<8x16xf32, #tpu.memory_space<vmem>>, vector<8x16xf32>
    %c0_2 = arith.constant 0 : index
    %c0_3 = arith.constant 0 : index
    %4 = vector.load %arg3[%c0_2, %c0_3] : memref<8x1xi32, #tpu.memory_space<vmem>>, vector<8x1xi32>
    %cst = arith.constant dense<0xFF800000> : vector<8xf32>
    %5 = vector.multi_reduction <maximumf>, %3, %cst [1] : vector<8x16xf32> to vector<8xf32>
    %6 = vector.shape_cast %5 : vector<8xf32> to vector<8x1xf32>
    %7 = vector.broadcast %6 : vector<8x1xf32> to vector<8x16xf32>
    %8 = arith.subf %3, %7 : vector<8x16xf32>
    %9 = math.exp %8 : vector<8x16xf32>
    %cst_4 = arith.constant dense<0.000000e+00> : vector<8xf32>
    %10 = vector.multi_reduction <add>, %9, %cst_4 [1] : vector<8x16xf32> to vector<8xf32>
    %11 = vector.shape_cast %10 : vector<8xf32> to vector<8x1xf32>
    %12 = math.log %11 : vector<8x1xf32>
    %13 = tpu.iota {dimensions = array<i32: 1>} : vector<1x16xi32>
    %14 = vector.broadcast %13 : vector<1x16xi32> to vector<8x16xi32>
    %15 = vector.broadcast %4 : vector<8x1xi32> to vector<8x16xi32>
    %16 = arith.cmpi eq, %14, %15 : vector<8x16xi32>
    %cst_5 = arith.constant 0.000000e+00 : f32
    %17 = vector.broadcast %cst_5 : f32 to vector<8x16xf32>
    %18 = arith.select %16, %8, %17 : vector<8x16xi1>, vector<8x16xf32>
    %cst_6 = arith.constant dense<0.000000e+00> : vector<8xf32>
    %19 = vector.multi_reduction <add>, %18, %cst_6 [1] : vector<8x16xf32> to vector<8xf32>
    %20 = vector.shape_cast %19 : vector<8xf32> to vector<8x1xf32>
    %21 = arith.subf %20, %12 : vector<8x1xf32>
    %22 = math.exp %21 : vector<8x1xf32>
    %cst_7 = arith.constant 1.000000e+00 : f32
    %23 = vector.broadcast %cst_7 : f32 to vector<8x1xf32>
    %24 = arith.subf %23, %22 : vector<8x1xf32>
    %25 = arith.mulf %24, %24 : vector<8x1xf32>
    %26 = arith.mulf %25, %21 : vector<8x1xf32>
    %c0_8 = arith.constant 0 : index
    %c0_9 = arith.constant 0 : index
    %27 = vector.load %arg5[%c0_8, %c0_9] : memref<1x1xf32, #tpu.memory_space<vmem>>, vector<1x1xf32>
    %28 = vector.shape_cast %26 : vector<8x1xf32> to vector<1x8x1xf32>
    %cst_10 = arith.constant dense<0.000000e+00> : vector<1xf32>
    %29 = vector.multi_reduction <add>, %28, %cst_10 [1, 2] : vector<1x8x1xf32> to vector<1xf32>
    %30 = vector.shape_cast %29 : vector<1xf32> to vector<1x1x1xf32>
    %31 = vector.extract %30[0, 0, 0] : f32 from vector<1x1x1xf32>
    %32 = vector.broadcast %31 : f32 to vector<1x1xf32>
    %cst_11 = arith.constant 0.000000e+00 : f32
    %33 = vector.broadcast %cst_11 : f32 to vector<1x1xf32>
    %34 = arith.subf %33, %32 : vector<1x1xf32>
    %35 = arith.addf %27, %34 : vector<1x1xf32>
    %c0_12 = arith.constant 0 : index
    %c0_13 = arith.constant 0 : index
    %36 = vector.load %arg5[%c0_12, %c0_13] : memref<1x1xf32, #tpu.memory_space<vmem>>, vector<1x1xf32>
    tpu.vector_store %arg5[%c0_12, %c0_13], %35 {strides = array<i32>} : memref<1x1xf32, #tpu.memory_space<vmem>>, vector<1x1xf32>,
    %c0_i32_14 = arith.constant 0 : i32
    %37 = arith.cmpi eq, %arg1, %c0_i32_14 : i32
    %38 = arith.extui %37 : i1 to i32
    %c0_i32_15 = arith.constant 0 : i32
    %39 = arith.cmpi ne, %38, %c0_i32_15 : i32
    scf.if %39 {
      %c0_16 = arith.constant 0 : index
      %c0_17 = arith.constant 0 : index
      %40 = vector.load %arg5[%c0_16, %c0_17] : memref<1x1xf32, #tpu.memory_space<vmem>>, vector<1x1xf32>
      %41 = vector.shape_cast %40 : vector<1x1xf32> to vector<1x1xf32>
      %42 = vector.broadcast %41 : vector<1x1xf32> to vector<8x128xf32>
      %43 = vector.shape_cast %42 : vector<8x128xf32> to vector<1x8x128xf32>
      %c0_18 = arith.constant 0 : index
      %c0_19 = arith.constant 0 : index
      %c0_20 = arith.constant 0 : index
      %44 = vector.load %arg4[%c0_18, %c0_19, %c0_20] : memref<1x8x128xf32, #tpu.memory_space<vmem>>, vector<1x8x128xf32>
      tpu.vector_store %arg4[%c0_18, %c0_19, %c0_20], %43 {strides = array<i32>} : memref<1x8x128xf32, #tpu.memory_space<vmem>>, vector<1x8x128xf32>,
    } else {
    }
    return
  }
  func.func @transform_0(%arg0: i32, %arg1: i32) -> (i32, i32) {
    %c1_i32 = arith.constant 1 : i32
    %0 = arith.muli %arg0, %c1_i32 : i32
    %1 = arith.addi %0, %arg1 : i32
    %c0_i32 = arith.constant 0 : i32
    %2 = arith.minsi %1, %c0_i32 : i32
    %c0_i32_0 = arith.constant 0 : i32
    %c0_i32_1 = arith.constant 0 : i32
    return %2, %c0_i32_0 : i32, i32
  }
  func.func @transform_1(%arg0: i32, %arg1: i32) -> (i32, i32) {
    %c1_i32 = arith.constant 1 : i32
    %0 = arith.muli %arg0, %c1_i32 : i32
    %1 = arith.addi %0, %arg1 : i32
    %c0_i32 = arith.constant 0 : i32
    %2 = arith.minsi %1, %c0_i32 : i32
    %c0_i32_0 = arith.constant 0 : i32
    %c0_i32_1 = arith.constant 0 : i32
    return %2, %c0_i32_0 : i32, i32
  }
  func.func @transform_2(%arg0: i32, %arg1: i32) -> (i32, i32, i32) {
    %c0_i32 = arith.constant 0 : i32
    %c0_i32_0 = arith.constant 0 : i32
    %c0_i32_1 = arith.constant 0 : i32
    return %arg0, %c0_i32, %c0_i32_0 : i32, i32, i32
  }
}

</mosaic_0001>

<bundles_post_ra>
// kernel: tpu_custom_call.1
= control target key start
LH: loop header
LB: loop body
LE: loop exit
PB: predicated region body
PF: predicated region fallthrough
CT: control target
= control target key end

     0   :  { %vm74_vm0 = vcmask 130048   ;;  %s238_s0 = inlined_call_operand.vmem [shape: f32[8,16], index: 0, kind: input, shape index: {}]   ;;  %s239_s1 = inlined_call_operand.vmem [shape: s32[8,1], index: 1, kind: input, shape index: {}]   ;;  %s240_s2 = inlined_call_operand.hbm [shape: f32[1,8,128], index: 2, kind: output, shape index: {}]  }
   0x1   :  { %v72_v0 = vld [vmem:[%s238_s0] sm:$0xff] }
   0x2   :  { %7 = vsyncpa [#allocation4], 0  ;;  %v75_v1 = vsel %vm74_vm0, %v72_v0, -inf  ;;  %v197_v2 = vmov 0   ;;  %v73_v3 = vld [vmem:[%s239_s1] sm:$0xff]  ;;  %v86_v7 = vlaneseq  ;;  %vm103_vm2 = vcmask 7168  }
   0x3   :  { %165 = vset.pattern.permute.xlu0 %v197_v2  ;;  %166 = vset.pattern.permute.xlu1 %v197_v2  ;;  %vm70_vm3 = vcmask 0   ;;  %v198_v25 = vmov 0.0   ;;  %s199_s1 = smov [#allocation3]  }
   0x4   :  { %76 = vmax.xlane.f32.xlu0 %v75_v1  ;;  %v87_v8 = vand.u32 127, %v86_v7  ;;  %71 = vst.msk [vmem:[#allocation2] sm:$0x1] %vm70_vm3, %v198_v25  ;;  %s139_s13 = sshll.u32 %s199_s1, 4  ;;  %s140_s13 = int_to_ptr.vmem [resolvable:$true] %s139_s13 }
   0x5   :  { %s173_s14 = scalar_lea.vmem %s140_s13, 128  ;;  %p178_p1 = scmp.lt.s32.totalorder %s140_s13, %s140_s13 }
   0x6   :  { %p174_p0 = scmp.ne.s32.totalorder %s140_s13, %s173_s14  ;;  %p179_p2 = scmp.lt.s32.totalorder %s173_s14, %s173_s14 }
   0x8   :  { %p180_p3 = por %p179_p2, %p178_p1 }
   0xa   :  { %p181_p4 = pnand %p180_p3, %p174_p0 }
   0xb   :  { %v102_v33 = vld [vmem:[#allocation2] sm:$0x1] }
  0x1a   :  { %89 = vperm.xlu0 %165, %v73_v3  }
  0x91   :  { %v77_v4 = vpop.xlane.xlu0 %76 }
  0x92   :  { %v78_v5 = vsub.f32 %v72_v0, %v77_v4 }
  0x94   :  { %v79_v6 = vmul.f32 1.442695, %v78_v5 }
  0x96   :  { %167 = vpow2.f32 %v79_v6 }
  0x99   :  { %v90_v9 = vpop.permute.xlu0 %89 }
  0x9a   :  { %vm91_vm1 = vcmp.eq.s32.totalorder %v87_v8, %v90_v9 }
  0x9b   :  { %v92_v12 = vsel %vm91_vm1, %v78_v5, 0.0 }
  0x9c   :  { %v93_v13 = vsel %vm74_vm0, %v92_v12, 0.0 }
  0xa0   :  { %v168_v10 = vpop.eup %167 }
  0xa1   :  { %v81_v11 = vsel %vm74_vm0, %v168_v10, 0.0 }
  0xa2   :  { %82 = vadd.xlane.f32.xlu1 %v81_v11 }
  0xa6   :  { %94 = vadd.xlane.f32.xlu1 %v93_v13 }
 0x12f   :  { %v83_v14 = vpop.xlane.xlu1 %82 }
 0x130   :  { %169 = vlog2.f32 %v83_v14 }
 0x133   :  { %v95_v17 = vpop.xlane.xlu1 %94 }
 0x13a   :  { %v170_v15 = vpop.eup %169 }
 0x13b   :  { %v85_v16 = vmul.f32 0.6931472, %v170_v15 }
 0x13d   :  { %v96_v18 = vsub.f32 %v95_v17, %v85_v16 }
 0x13f   :  { %v97_v19 = vmul.f32 1.442695, %v96_v18 }
 0x141   :  { %171 = vpow2.f32 %v97_v19 }
 0x14b   :  { %v172_v20 = vpop.eup %171 }
 0x14c   :  { %v99_v21 = vsub.f32 1.0, %v172_v20 }
 0x14e   :  { %v100_v22 = vmul.f32 %v99_v21, %v99_v21 }
 0x150   :  { %v101_v23 = vmul.f32 %v100_v22, %v96_v18 }
 0x152   :  { %v104_v24 = vsel %vm103_vm2, %v101_v23, 0.0 }
 0x153   :  { %105 = vadd.xlane.f32.xlu1 %v104_v24 }
 0x1e0   :  { %v106_v26 = vpop.xlane.xlu1 %105 }
 0x1e1   :  { %v107_v27 = vrot.slane %v106_v26, 4 }
 0x1e3   :  { %v108_v28 = vadd.f32 %v107_v27, %v106_v26 }
 0x1e5   :  { %v109_v29 = vrot.slane %v108_v28, 2 }
 0x1e7   :  { %v110_v30 = vadd.f32 %v109_v29, %v108_v28 }
 0x1e9   :  { %v111_v31 = vrot.slane %v110_v30, 1 }
 0x1eb   :  { %v112_v32 = vadd.f32 %v111_v31, %v110_v30 }
 0x1ed   :  { %160 = vpush %v112_v32 }
 0x21e   :  { %s161_s0 = spop %160 }
 0x21f   :  { %v114_v34 = vstv %s161_s0 }
 0x220   :  { %v115_v35 = vsub.f32 0.0, %v114_v34 }
 0x222   :  { %v116_v36 = vadd.f32 %v115_v35, %v102_v33 }
 0x224   :  { %118 = vst.msk [vmem:[#allocation2] sm:$0x1] %vm70_vm3, %v116_v36 }
 0x22b   :  { %v159_v37 = vld [vmem:[#allocation2] ss:$0 sm:$0xff] }
 0x22c   :  { %129 = vperm.xlu1 %166, %v159_v37  }
 0x2ab   :  { %v130_v38 = vpop.permute.xlu1 %129 }
 0x2ac   :  { %132 = vst [vmem:[#allocation3] sm:$0xff] %v130_v38 }
 0x2ad   :  { %184 = shalt.err (!%p181_p4)
}
 0x2ae   :  { %s185_s17 = scalar_lea.hbm %s240_s2, 128 }
 0x2af   :  { %p186_p5 = scmp.ne.s32.totalorder %s240_s2, %s185_s17  ;;  %p189_p6 = scmp.lt.u32.totalorder %s185_s17, %s240_s2 }
 0x2b1   :  { %p191_p7 = pnand %p189_p6, %p186_p5 }
 0x2b3   :  { %194 = shalt.err (!%p191_p7)
}
 0x2b4   :  { %142 = dma.vmem_to_hbm [thread:$0]  %s140_s13, 128, %s240_s2, [#allocation4]  }
 0x2b5   :  { %195 = dma.done.wait [#allocation4], 128  }
 0x2b6   :  { %196 = vsyncadd [#allocation4], 4294967168 }
 0x2b7   :  { %146 = vsyncpa [#allocation4], 1 }

</bundles_post_ra>
